<compile_context>
chip_gen: v7x
topology: tpu7x:2x2x1
jax: 0.10.0
libtpu: 0.0.40
codegen_flags: <defaults>
</compile_context>

<pallas_src>
import math
from functools import partial

import jax
import jax.numpy as jnp
import numpy as np
from jax.experimental import pallas as pl
from jax.experimental.pallas import tpu as pltpu

REL_THR = 0.7
REP_THR = 0.7

_TARGET_TILE_BYTES = 2 << 20   # ~2 MiB per input tile (HBM-roofline friendly)


def _nms_kernel(rel_ref, rep_ref, mask_ref, *, plane_h):
    """Block = (tb * plane_h, W_pad): tb planes stacked along the row axis."""
    th, wp = rep_ref.shape
    neg = jnp.float32(-jnp.inf)

    rep = rep_ref[...].astype(jnp.float32)
    rel = rel_ref[...].astype(jnp.float32)

    # Row-in-plane / column indices, built once per block.
    row = jax.lax.broadcasted_iota(jnp.int32, (th, wp), 0) % plane_h
    col = jax.lax.broadcasted_iota(jnp.int32, (th, wp), 1)

    # Separable 3x3 max pool, stride 1, -inf padding.
    # Horizontal pass: left / self / right neighbors (XLU lane rolls).
    left = jnp.where(col == 0, neg, pltpu.roll(rep, shift=1, axis=1))
    right = jnp.where(col == wp - 1, neg, pltpu.roll(rep, shift=wp - 1, axis=1))
    hmax = jnp.maximum(rep, jnp.maximum(left, right))

    # Vertical pass: up / self / down.  The row-in-plane masks also cut the
    # roll wrap-around and any bleed between stacked planes / OOB-padded rows
    # in a partial last block.
    up = jnp.where(row == 0, neg, pltpu.roll(hmax, shift=1, axis=0))
    down = jnp.where(row == plane_h - 1, neg,
                     pltpu.roll(hmax, shift=th - 1, axis=0))
    pooled = jnp.maximum(hmax, jnp.maximum(up, down))

    maxima = (rep == pooled) & (rep >= REP_THR) & (rel >= REL_THR)
    mask_ref[...] = maxima.astype(jnp.int8)


def _choose_planes_per_block(n, plane_h, plane_bytes):
    """Planes per block: big DMAs, >= 2 grid steps, legal/dense row tiling."""
    desired = max(1, _TARGET_TILE_BYTES // max(plane_bytes, 1))
    desired = min(desired, n)
    if n >= 2:
        # keep at least 2 grid steps so v7x can shard the axis over its 2 TCs
        desired = min(desired, pl.cdiv(n, 2))

    # Row granularity: prefer block rows % 32 == 0 (dense int8 packing),
    # fall back to % 8 == 0 (minimum (8,128) tiling).
    g = 32 // math.gcd(plane_h, 32)
    if g > desired:
        g = 8 // math.gcd(plane_h, 8)
    tb = (desired // g) * g
    if tb < 1:
        # No legal partial block at this granularity; a full-extent row block
        # is always a legal tiling (grid collapses to 1).
        return n

    # Prefer an even grid so v7x's two TensorCores stay balanced.
    grid = pl.cdiv(n, tb)
    if grid > 1 and grid % 2 == 1 and tb > g and pl.cdiv(n, tb - g) % 2 == 0:
        tb -= g
    return tb


def nms_mask(reliability, repeatability):
    """NMS mask (int8 0/1), same NCHW shape as the inputs."""
    assert reliability.shape == repeatability.shape
    B, C, H, W = repeatability.shape
    n = B * C

    # Flatten planes onto the row axis: one dense 2-D problem.
    rel = reliability.reshape(n * H, W)
    rep = repeatability.reshape(n * H, W)

    # Lane-dense last dim: pad W up to a multiple of 128 with -inf (rep) / 0
    # (rel).  -inf pad columns never pass rep_thr and act exactly like the
    # MaxPool2d -inf border for the real last column.
    w_pad = W if W % 128 == 0 else ((W + 127) // 128) * 128
    if w_pad != W:
        pw = w_pad - W
        rep = jnp.pad(rep, ((0, 0), (0, pw)), constant_values=-jnp.inf)
        rel = jnp.pad(rel, ((0, 0), (0, pw)))

    plane_bytes = H * w_pad * rep.dtype.itemsize
    tb = _choose_planes_per_block(n, H, plane_bytes)
    grid = pl.cdiv(n, tb)
    th = tb * H

    # Double-buffered inputs + double-buffered int8 output + margin.
    needed = 2 * 2 * th * w_pad * rep.dtype.itemsize + 2 * th * w_pad
    vmem_limit = int(max(needed + (4 << 20), 16 << 20))

    mask2d = pl.pallas_call(
        partial(_nms_kernel, plane_h=H),
        out_shape=jax.ShapeDtypeStruct((n * H, w_pad), jnp.int8),
        grid_spec=pltpu.PrefetchScalarGridSpec(
            num_scalar_prefetch=0,
            grid=(grid,),
            in_specs=[pl.BlockSpec((th, w_pad), lambda i: (i, 0)),
                      pl.BlockSpec((th, w_pad), lambda i: (i, 0))],
            out_specs=pl.BlockSpec((th, w_pad), lambda i: (i, 0))),
        compiler_params=pltpu.CompilerParams(
            dimension_semantics=("parallel",),
            vmem_limit_bytes=vmem_limit),
    )(rel, rep)

    mask = mask2d.reshape(n, H, w_pad)[:, :, :W]
    return mask.reshape(B, C, H, W)


def non_max_suppression(reliability, repeatability):
    """Mirrors NonMaxSuppression.forward: lists of length 1, returns (2, N)."""
    assert len(reliability) == len(repeatability) == 1
    rel, rep = reliability[0], repeatability[0]
    mask = nms_mask(rel, rep)
    # TODO(synk): dynamic-shape .nonzero() has no Pallas equivalent (data
    # dependent output size); coordinate extraction done in plain JAX on the
    # concrete mask produced by the kernel.
    idx = jnp.nonzero(mask)                 # (b, c, y, x) index arrays
    return jnp.stack(idx[2:4], axis=0)      # rows 2:4 -> (y, x), shape (2, N)


def _ref_mask_np(rel, rep, rep_thr=REP_THR, rel_thr=REL_THR):
    rel = np.asarray(rel, np.float32)
    rep = np.asarray(rep, np.float32)
    B, C, H, W = rep.shape
    p = np.pad(rep, ((0, 0), (0, 0), (1, 1), (1, 1)),
               constant_values=-np.inf)
    pooled = np.max(
        np.stack([p[:, :, dy:dy + H, dx:dx + W]
                  for dy in range(3) for dx in range(3)], axis=0),
        axis=0)
    return (rep == pooled) & (rep >= rep_thr) & (rel >= rel_thr)


def _check(shape, seed):
    k1, k2 = jax.random.split(jax.random.PRNGKey(seed))
    reliability = [jax.random.uniform(k1, shape, dtype=jnp.float32)]
    repeatability = [jax.random.uniform(k2, shape, dtype=jnp.float32)]

    mask = jax.block_until_ready(nms_mask(reliability[0], repeatability[0]))
    coords = jax.block_until_ready(non_max_suppression(reliability,
                                                       repeatability))

    ref = _ref_mask_np(reliability[0], repeatability[0])
    assert np.array_equal(np.asarray(mask).astype(bool), ref), \
        f"mask mismatch for shape {shape}"
    ref_coords = np.stack(np.nonzero(ref)[2:4], axis=0)
    assert np.array_equal(np.asarray(coords), ref_coords), \
        f"coord mismatch for shape {shape}"


if __name__ == "__main__":
    # Lane-aligned case (no padding, even grid).
    _check((2, 4, 16, 128), seed=0)
    # Unaligned case: W padded to 128, partial last block (n=5, tb=2).
    _check((1, 5, 12, 96), seed=1)
    print("KERNEL_OK")
</pallas_src>

<mosaic_0001>
module attributes {stable_mosaic.version = 11 : i64} {
  func.func @_nms_kernel(%arg0: i32, %arg1: memref<64x128xf32, #tpu.memory_space<vmem>>, %arg2: memref<64x128xf32, #tpu.memory_space<vmem>>, %arg3: memref<64x128xi8, #tpu.memory_space<vmem>>) attributes {dimension_semantics = [#tpu.dimension_semantics<parallel>], iteration_bounds = array<i64: 2>, scalar_prefetch = 0 : i64, scratch_operands = 0 : i64, tpu.core_type = #tpu.core_type<tc>, window_params = [{transform_indices = @transform_0, window_bounds = array<i64: 64, 128>}, {transform_indices = @transform_1, window_bounds = array<i64: 64, 128>}, {transform_indices = @transform_2, window_bounds = array<i64: 64, 128>}]} {
    %c0 = arith.constant 0 : index
    %c0_0 = arith.constant 0 : index
    %0 = vector.load %arg2[%c0, %c0_0] : memref<64x128xf32, #tpu.memory_space<vmem>>, vector<64x128xf32>
    %c0_1 = arith.constant 0 : index
    %c0_2 = arith.constant 0 : index
    %1 = vector.load %arg1[%c0_1, %c0_2] : memref<64x128xf32, #tpu.memory_space<vmem>>, vector<64x128xf32>
    %2 = tpu.iota {dimensions = array<i32: 0>} : vector<64x128xi32>
    %c16_i32 = arith.constant 16 : i32
    %c0_i32 = arith.constant 0 : i32
    %3 = arith.cmpi eq, %c16_i32, %c0_i32 : i32
    %c1_i32 = arith.constant 1 : i32
    %4 = arith.select %3, %c1_i32, %c16_i32 : i32
    %5 = vector.broadcast %4 : i32 to vector<64x128xi32>
    %6 = arith.remsi %2, %5 : vector<64x128xi32>
    %c0_i32_3 = arith.constant 0 : i32
    %7 = vector.broadcast %c0_i32_3 : i32 to vector<64x128xi32>
    %8 = arith.cmpi ne, %6, %7 : vector<64x128xi32>
    %c0_i32_4 = arith.constant 0 : i32
    %9 = vector.broadcast %c0_i32_4 : i32 to vector<64x128xi32>
    %10 = arith.cmpi slt, %6, %9 : vector<64x128xi32>
    %c0_i32_5 = arith.constant 0 : i32
    %11 = arith.cmpi slt, %4, %c0_i32_5 : i32
    %12 = vector.broadcast %11 : i1 to vector<64x128xi1>
    %13 = vector.broadcast %12 : vector<64x128xi1> to vector<64x128xi1>
    %14 = arith.xori %10, %13 : vector<64x128xi1>
    %15 = arith.andi %14, %8 : vector<64x128xi1>
    %16 = vector.broadcast %4 : i32 to vector<64x128xi32>
    %17 = arith.addi %6, %16 : vector<64x128xi32>
    %18 = arith.select %15, %17, %6 : vector<64x128xi1>, vector<64x128xi32>
    %19 = tpu.iota {dimensions = array<i32: 1>} : vector<64x128xi32>
    %c0_i32_6 = arith.constant 0 : i32
    %20 = vector.broadcast %c0_i32_6 : i32 to vector<64x128xi32>
    %21 = arith.cmpi eq, %19, %20 : vector<64x128xi32>
    %c1_i32_7 = arith.constant 1 : i32
    %22 = tpu.dynamic_rotate %0 by %c1_i32_7 dim 1 : vector<64x128xf32>, i32 -> vector<64x128xf32>
    %cst = arith.constant 0xFF800000 : f32
    %23 = vector.broadcast %cst : f32 to vector<64x128xf32>
    %24 = arith.select %21, %23, %22 : vector<64x128xi1>, vector<64x128xf32>
    %c127_i32 = arith.constant 127 : i32
    %25 = vector.broadcast %c127_i32 : i32 to vector<64x128xi32>
    %26 = arith.cmpi eq, %19, %25 : vector<64x128xi32>
    %c127_i32_8 = arith.constant 127 : i32
    %27 = tpu.dynamic_rotate %0 by %c127_i32_8 dim 1 : vector<64x128xf32>, i32 -> vector<64x128xf32>
    %cst_9 = arith.constant 0xFF800000 : f32
    %28 = vector.broadcast %cst_9 : f32 to vector<64x128xf32>
    %29 = arith.select %26, %28, %27 : vector<64x128xi1>, vector<64x128xf32>
    %30 = arith.maximumf %24, %29 : vector<64x128xf32>
    %31 = arith.maximumf %0, %30 : vector<64x128xf32>
    %c0_i32_10 = arith.constant 0 : i32
    %32 = vector.broadcast %c0_i32_10 : i32 to vector<64x128xi32>
    %33 = arith.cmpi eq, %18, %32 : vector<64x128xi32>
    %c1_i32_11 = arith.constant 1 : i32
    %34 = tpu.dynamic_rotate %31 by %c1_i32_11 dim 0 : vector<64x128xf32>, i32 -> vector<64x128xf32>
    %cst_12 = arith.constant 0xFF800000 : f32
    %35 = vector.broadcast %cst_12 : f32 to vector<64x128xf32>
    %36 = arith.select %33, %35, %34 : vector<64x128xi1>, vector<64x128xf32>
    %c15_i32 = arith.constant 15 : i32
    %37 = vector.broadcast %c15_i32 : i32 to vector<64x128xi32>
    %38 = arith.cmpi eq, %18, %37 : vector<64x128xi32>
    %c63_i32 = arith.constant 63 : i32
    %39 = tpu.dynamic_rotate %31 by %c63_i32 dim 0 : vector<64x128xf32>, i32 -> vector<64x128xf32>
    %cst_13 = arith.constant 0xFF800000 : f32
    %40 = vector.broadcast %cst_13 : f32 to vector<64x128xf32>
    %41 = arith.select %38, %40, %39 : vector<64x128xi1>, vector<64x128xf32>
    %42 = arith.maximumf %36, %41 : vector<64x128xf32>
    %43 = arith.maximumf %31, %42 : vector<64x128xf32>
    %44 = arith.cmpf oeq, %0, %43 : vector<64x128xf32>
    %cst_14 = arith.constant 0.699999988 : f32
    %45 = vector.broadcast %cst_14 : f32 to vector<64x128xf32>
    %46 = arith.cmpf oge, %0, %45 : vector<64x128xf32>
    %47 = arith.andi %44, %46 : vector<64x128xi1>
    %cst_15 = arith.constant 0.699999988 : f32
    %48 = vector.broadcast %cst_15 : f32 to vector<64x128xf32>
    %49 = arith.cmpf oge, %1, %48 : vector<64x128xf32>
    %50 = arith.andi %47, %49 : vector<64x128xi1>
    %51 = arith.extui %50 : vector<64x128xi1> to vector<64x128xi8>
    %c0_16 = arith.constant 0 : index
    %c0_17 = arith.constant 0 : index
    %52 = vector.load %arg3[%c0_16, %c0_17] : memref<64x128xi8, #tpu.memory_space<vmem>>, vector<64x128xi8>
    tpu.vector_store %arg3[%c0_16, %c0_17], %51 {strides = array<i32>} : memref<64x128xi8, #tpu.memory_space<vmem>>, vector<64x128xi8>,
    return
  }
  func.func @transform_0(%arg0: i32) -> (i32, i32) {
    %c0_i32 = arith.constant 0 : i32
    %c0_i32_0 = arith.constant 0 : i32
    return %arg0, %c0_i32 : i32, i32
  }
  func.func @transform_1(%arg0: i32) -> (i32, i32) {
    %c0_i32 = arith.constant 0 : i32
    %c0_i32_0 = arith.constant 0 : i32
    return %arg0, %c0_i32 : i32, i32
  }
  func.func @transform_2(%arg0: i32) -> (i32, i32) {
    %c0_i32 = arith.constant 0 : i32
    %c0_i32_0 = arith.constant 0 : i32
    return %arg0, %c0_i32 : i32, i32
  }
}

</mosaic_0001>

<bundles_post_ra>
// kernel: tpu_custom_call.1
= control target key start
LH: loop header
LB: loop body
LE: loop exit
PB: predicated region body
PF: predicated region fallthrough
CT: control target
= control target key end

     0   :  { %7 = vsyncpa [#allocation3], 0  ;;  %s1440_s0 = inlined_call_operand.hbm [shape: f32[128,128], index: 0, kind: input, shape index: {}]   ;;  %s1441_s1 = inlined_call_operand.hbm [shape: f32[128,128], index: 1, kind: input, shape index: {}]   ;;  %s1442_s2 = inlined_call_operand.hbm [shape: s8[128,128], index: 2, kind: output, shape index: {}]  }
   0x1   :  { %9 = vsyncpa [#allocation3 + $0x1], 0 }
   0x2   :  { %10 = vsyncpa [#allocation6], 0 }
   0x3   :  { %12 = vsyncpa [#allocation6 + $0x1], 0 }
   0x4   :  { %13 = vsyncpa [#allocation4], 0 }
   0x5   :  { %15 = vsyncpa [#allocation4 + $0x1], 0  ;;  %s874_s9 = smov 0   ;;  %s876_s10 = smov 0  }
   0x6   :  { %s878_s11 = smov 0   ;;  %s880_s12 = smov 0  }
   0x7 LB: > { %s895_s13 = sadd.s32 4294967295, %s847_s12   ;;  %s638_s14 = sadd.s32 4294967294, %s847_s12   ;;  %s847_s12 = sphi %s880_s12, %s1509_s12   ;;  %s843_s11 = sphi %s878_s11, %s1508_s11   ;;  %s839_s10 = sphi %s876_s10, %s1507_s10   ;;  %s835_s9 = sphi %s874_s9, %s1506_s9  }
   0x8   : > { %s899_s15 = sadd.s32 1, %s847_s12   ;;  %s28_s16 = sadd.s32 1, %s843_s11 }
   0x9   : > { %s25_s17 = ssub.s32 %s847_s12, %s899_s15  ;;  %p35_p0 = scmp.ne.s32.totalorder %s843_s11, %s839_s10 }
   0xa   : > { %p26_p1 = scmp.eq.s32.totalorder %s25_s17, 0  ;;  %p36_p2 = scmp.eq.s32.totalorder %s847_s12, 0 }
   0xb   : > { %p41_p3 = scmp.ne.s32.totalorder %s839_s10, %s835_s9  ;;  %p42_p4 = scmp.eq.s32.totalorder %s895_s13, 0 }
   0xc   : > { %s911_s18 = scalar_select %p26_p1, %s843_s11, %s28_s16  }
   0xd   : > { %p913_p5 = por %p36_p2, %p35_p0  ;;  %p917_p6 = por %p42_p4, %p41_p3 }
   0xe   : > { %p91_p7 = scmp.eq.s32.totalorder %s895_s13, 1  ;;  %p97_p8 = scmp.eq.s32.totalorder %s638_s14, 1 }
   0xf   : > { %s1448_s20 = scalar_select %p917_p6, 1, 0 }
  0x10   : > { %p676_p10 = scmp.lt.s32.totalorder %s847_s12, 2  ;;  %p924_p11 = por %p91_p7, %p35_p0 }
  0x11   : > { %p928_p12 = por %p97_p8, %p41_p3  ;;  %s933_s23 = sand.u32 1, %s843_s11  }
  0x12   : > { %s1449_s21 = scalar_select %p924_p11, 1, 0 }
  0x13   : > { %s1450_s22 = scalar_select %p928_p12, 1, 0 }
  0x14   : > { %s656_s24 = sshll.u32 %s847_s12, 10  ;;  %s641_s25 = sshll.u32 %s933_s23, 6 }
  0x15   : > { %s942_s28 = scalar_lea.hbm %s1440_s0, %s656_s24  ;;  %s121_s29 = scalar_lea.vmem [#allocation2], %s641_s25 }
  0x16   : > { %s128_s30 = sshll.u32 %s121_s29, 4  ;;  %p948_p13 = pnand %p676_p10, %p913_p5  ;;  %s952_s30 = int_to_ptr.vmem [resolvable:$true] %s128_s30 }
  0x17   : > { %s118_s4 = scalar_lea.sflag [#allocation3], %s933_s23  ;;  %s717_s5 = scalar_lea.hbm %s942_s28, 1024 }
  0x18   : > { %p718_p0 = scmp.ne.s32.totalorder %s942_s28, %s717_s5  ;;  %p719_p1 = pneg %p948_p13 }
  0x19   : > { %s722_s8 = scalar_lea.hbm %s1440_s0, 2048  ;;  %p723_p4 = scmp.lt.u32.totalorder %s942_s28, %s1440_s0 }
  0x1a   : > { %p720_p2 = pnand %p719_p1, %p718_p0  ;;  %p724_p5 = scmp.lt.u32.totalorder %s722_s8, %s717_s5 }
  0x1b   : > { %p726_p8 = scmp.lt.u32.totalorder %s717_s5, %s942_s28 }
  0x1c   : > { %p721_p3 = pneg %p720_p2  ;;  %p725_p7 = por %p724_p5, %p723_p4 }
  0x1e   : > { %p727_p10 = por %p726_p8, %p725_p7 }
  0x20   : > { %p728_p9 = pnand %p727_p10, %p721_p3 }
  0x22   : > { %731 = shalt.err (!%p728_p9)
}
  0x23   : > { %s732_s17 = scalar_lea.vmem %s952_s30, 1024  ;;  %s849_s19 = smov [#allocation2]  }
  0x24   : > { %p733_p0 = scmp.ne.s32.totalorder %s952_s30, %s732_s17  ;;  %s737_s26 = sshll.u32 %s849_s19, 4  ;;  %s738_s26 = int_to_ptr.vmem [resolvable:$false] %s737_s26 }
  0x25   : > { %s739_s27 = scalar_lea.vmem %s738_s26, 2048  ;;  %p740_p11 = scmp.lt.s32.totalorder %s952_s30, %s738_s26 }
  0x26   : > { %p735_p2 = pnand %p733_p0, %p719_p1  ;;  %p741_p4 = scmp.lt.s32.totalorder %s739_s27, %s732_s17 }
  0x28   : > { %p736_p12 = pneg %p735_p2  ;;  %p742_p5 = por %p741_p4, %p740_p11 }
  0x2a   : > { %p743_p7 = pnand %p742_p5, %p736_p12 }
  0x2c   : > { %746 = shalt.err (!%p743_p7)
}
  0x2d   : > { %s850_s29 = smov 128   ;;  %s851_s5 = smov 8  }
  0x2e   : > { %668 = dma.hbm_to_vmem [thread:$0]  (!%p948_p13), %s942_s28, 1024, %s952_s30, %s118_s4, %s850_s29, %s850_s29, %s851_s5  }
  0x2f   : > { %p647_p9 = scmp.ge.s32.totalorder %s847_s12, 1  ;;  %p157_p11 = scmp.lt.s32.totalorder %s847_s12, 3 }
  0x30   : > { %s996_s14 = scalar_lea.hbm %s1441_s1, %s656_s24  ;;  %s142_s16 = scalar_lea.vmem [#allocation5], %s641_s25 }
  0x31   : > { %p987_p12 = pnand %p647_p9, %p157_p11  ;;  %s149_s17 = sshll.u32 %s142_s16, 4  ;;  %s1000_s17 = int_to_ptr.vmem [resolvable:$true] %s149_s17 }
  0x32   : > { %s139_s28 = scalar_lea.sflag [#allocation6], %s933_s23  ;;  %s747_s30 = scalar_lea.hbm %s996_s14, 1024 }
  0x33   : > { %p748_p3 = scmp.ne.s32.totalorder %s996_s14, %s747_s30  ;;  %s752_s24 = scalar_lea.hbm %s1441_s1, 2048 }
  0x34   : > { %p753_p0 = scmp.lt.u32.totalorder %s996_s14, %s1441_s1  ;;  %p754_p2 = scmp.lt.u32.totalorder %s752_s24, %s747_s30 }
  0x35   : > { %p750_p8 = pnand %p748_p3, %p719_p1  ;;  %p756_p5 = scmp.lt.u32.totalorder %s747_s30, %s996_s14 }
  0x36   : > { %p755_p4 = por %p754_p2, %p753_p0 }
  0x37   : > { %p751_p10 = pneg %p750_p8 }
  0x38   : > { %p757_p7 = por %p756_p5, %p755_p4 }
  0x3a   : > { %p758_p9 = pnand %p757_p7, %p751_p10 }
  0x3c   : > { %761 = shalt.err (!%p758_p9)
}
  0x3d   : > { %s762_s25 = scalar_lea.vmem %s1000_s17, 1024  ;;  %s852_s7 = smov [#allocation5]  }
  0x3e   : > { %p763_p11 = scmp.ne.s32.totalorder %s1000_s17, %s762_s25  ;;  %s767_s8 = sshll.u32 %s852_s7, 4  ;;  %s768_s8 = int_to_ptr.vmem [resolvable:$false] %s767_s8 }
  0x3f   : > { %s769_s16 = scalar_lea.vmem %s768_s8, 2048  ;;  %p770_p6 = scmp.lt.s32.totalorder %s1000_s17, %s768_s8 }
  0x40   : > { %p765_p3 = pnand %p763_p11, %p719_p1  ;;  %p771_p0 = scmp.lt.s32.totalorder %s769_s16, %s762_s25 }
  0x42   : > { %p766_p8 = pneg %p765_p3  ;;  %p772_p2 = por %p771_p0, %p770_p6 }
  0x44   : > { %p773_p4 = pnand %p772_p2, %p766_p8 }
  0x46   : > { %776 = shalt.err (!%p773_p4)
}
  0x47   : > { %671 = dma.hbm_to_vmem [thread:$0]  (!%p948_p13), %s996_s14, 1024, %s1000_s17, %s139_s28, %s850_s29, %s850_s29, %s851_s5  }
  0x48   : > { %161 = sbr.rel (%p987_p12) target bundleno = 275 (0x113), region = 28  ;;  %s1034_s30 = sand.u32 (!%p987_p12), 1, %s839_s10  }
  0x49   : > { %s648_s4 = sshll.u32 (!%p987_p12), %s1034_s30, 6  ;;  %s164_s19 = scalar_lea.sflag (!%p987_p12), [#allocation3], %s1034_s30 }
  0x4a   : > { %s1038_s3 = scalar_lea.vmem (!%p987_p12), [#allocation2], %s648_s4  ;;  %p1453_p6 = scmp.ne.s32.totalorder (!%p987_p12), %s1448_s20, 0 }
  0x4f   : > { %822 = dma.done.wait (%p1453_p6), %s164_s19, 1024  }
  0x50   : > { %824 = vsyncadd (%p1453_p6), %s164_s19, 4294966272  ;;  %s173_s23 = scalar_lea.sflag [#allocation6], %s1034_s30  ;;  %s176_s29 = scalar_lea.vmem [#allocation5], %s648_s4 }
  0x51   : > { %826 = dma.done.wait (%p1453_p6), %s173_s23, 1024  }
  0x52   : > { %828 = vsyncadd (%p1453_p6), %s173_s23, 4294966272  ;;  %v1049_v0 = vld [vmem:[%s176_s29 + $0x10] sm:$0xff]  ;;  %v1051_v1 = vld [vmem:[%s176_s29] sm:$0xff]  ;;  %s853_s5 = smov 1   ;;  %s854_s20 = smov 127   ;;  %v223_v12 = vlaneseq }
  0x53   : > { %335 = vrot.lane.b32.xlu1 %v1049_v0, %s853_s5  ;;  %331 = vrot.lane.b32.xlu0 %v1051_v1, %s853_s5  ;;  %v1055_v2 = vld [vmem:[%s176_s29 + $0x18] sm:$0xff]  ;;  %v1057_v3 = vld [vmem:[%s176_s29 + $0x8] sm:$0xff]  ;;  %vm488_vm8 = vcmp.ge.f32.partialorder %v1049_v0, 0.7  ;;  %s650_s6 = sshll.u32 %s1034_s30, 4  ;;  %s658_s14 = sshll.u32 %s895_s13, 8 }
  0x54   : > { %v1061_v4 = vld [vmem:[%s176_s29 + $0x28] sm:$0xff]  ;;  %v1063_v5 = vld [vmem:[%s176_s29 + $0x20] sm:$0xff]  ;;  %v1067_v6 = vld [vmem:[%s176_s29 + $0x38] sm:$0xff]  ;;  %v1081_v15 = vshrl.u32 %v223_v12, 7  ;;  %v1083_v16 = vand.u32 127, %v223_v12  ;;  %s201_s17 = scalar_lea.vmem [#allocation7], %s650_s6  ;;  %s1394_s26 = scalar_lea.hbm %s1442_s2, %s658_s14 }
  0x55   : > { %v1069_v7 = vld [vmem:[%s176_s29 + $0x30] sm:$0xff]  ;;  %vm489_vm9 = vcmp.ge.f32.partialorder %v1055_v2, 0.7  ;;  %vm487_vm12 = vcmp.ge.f32.partialorder %v1057_v3, 0.7  ;;  %v1207_v46 = vld [vmem:[%s1038_s3 + $0x8] sm:$0xff] }
  0x56   : > { %vm330_vm0 = vcmp.eq.s32.totalorder %v1083_v16, 0  ;;  %vm355_vm1 = vcmp.eq.s32.totalorder %v1083_v16, 127  ;;  %v226_v19 = vadd.s32 16, %v1081_v15  ;;  %v225_v20 = vadd.s32 8, %v1081_v15  ;;  %s542_s28 = sshll.u32 %s201_s17, 4  ;;  %s529_s27 = scalar_lea.sflag [#allocation4], %s1034_s30  ;;  %s1396_s28 = int_to_ptr.vmem [resolvable:$true] %s542_s28 }
  0x57   : > { %337 = vrot.lane.b32.xlu1 %v1055_v2, %s853_s5  ;;  %333 = vrot.lane.b32.xlu0 %v1057_v3, %s853_s5  ;;  %v228_v21 = vadd.s32 32, %v1081_v15  ;;  %v227_v24 = vadd.s32 24, %v1081_v15  ;;  %vm412_vm2 = vcmp.lt.s32.totalorder %v1081_v15, 1  ;;  %vm445_vm3 = vcmp.lt.s32.totalorder %v1081_v15, 7  ;;  %s777_s25 = scalar_lea.vmem %s1396_s28, 256  ;;  %p1503_p1 = scmp.ne.s32.totalorder %s1449_s21, 0 }
  0x58   : > { %v250_v31 = vand.u32 15, %v226_v19  ;;  %v243_v32 = vand.u32 15, %v225_v20  ;;  %v231_v44 = vadd.s32 56, %v1081_v15  ;;  %v236_v62 = vand.u32 15, %v1081_v15  ;;  %p778_p13 = scmp.ne.s32.totalorder %s1396_s28, %s777_s25  ;;  %s856_s7 = smov [#allocation7]  }
  0x59   : > { %v264_v33 = vand.u32 15, %v228_v21  ;;  %v257_v38 = vand.u32 15, %v227_v24  ;;  %v230_v19 = vadd.s32 48, %v1081_v15  ;;  %v1166_v21 = vld [vmem:[%s1038_s3 + $0x10] sm:$0xff]  ;;  %s781_s8 = sshll.u32 %s856_s7, 4  ;;  %s782_s8 = int_to_ptr.vmem [resolvable:$false] %s781_s8 }
  0x5a   : > { %vm1119_vm4 = vcmp.eq.s32.totalorder %v250_v31, 0  ;;  %vm1124_vm5 = vcmp.eq.s32.totalorder %v243_v32, 15  ;;  %v285_v63 = vand.u32 15, %v231_v44  ;;  %vm1184_vm10 = vcmp.eq.s32.totalorder %v236_v62, 0  ;;  %p779_p12 = pnand %p778_p13, %p1503_p1  ;;  %s783_s16 = scalar_lea.vmem %s782_s8, 512 }
  0x5b   : > { %341 = vrot.lane.b32.xlu1 %v1061_v4, %s853_s5  ;;  %339 = vrot.lane.b32.xlu0 %v1063_v5, %s853_s5  ;;  %vm1128_vm6 = vcmp.eq.s32.totalorder %v264_v33, 0  ;;  %vm1138_vm7 = vcmp.eq.s32.totalorder %v257_v38, 15  ;;  %vm504_vm13 = vcmp.ge.f32.partialorder %v1166_v21, 0.7  ;;  %p784_p5 = scmp.lt.s32.totalorder %s1396_s28, %s782_s8  ;;  %p785_p7 = scmp.lt.s32.totalorder %s783_s16, %s777_s25 }
  0x5c   : > { %vm1188_vm11 = vcmp.eq.s32.totalorder %v285_v63, 15  ;;  %p780_p10 = pneg %p779_p12 }
  0x5d   : > { %p786_p9 = por %p785_p7, %p784_p5 }
  0x5f   : > { %345 = vrot.lane.b32.xlu1 %v1067_v6, %s853_s5  ;;  %343 = vrot.lane.b32.xlu0 %v1069_v7, %s853_s5  ;;  %p787_p11 = pnand %p786_p9, %p780_p10 }
  0x63   : > { %358 = vrot.lane.b32.xlu1 %v1057_v3, %s854_s20  ;;  %356 = vrot.lane.b32.xlu0 %v1051_v1, %s854_s20 }
  0x67   : > { %362 = vrot.lane.b32.xlu1 %v1055_v2, %s854_s20  ;;  %360 = vrot.lane.b32.xlu0 %v1049_v0, %s854_s20 }
  0x6b   : > { %366 = vrot.lane.b32.xlu1 %v1061_v4, %s854_s20  ;;  %364 = vrot.lane.b32.xlu0 %v1063_v5, %s854_s20 }
  0x6f   : > { %370 = vrot.lane.b32.xlu1 %v1067_v6, %s854_s20  ;;  %368 = vrot.lane.b32.xlu0 %v1069_v7, %s854_s20 }
  0xc5   : > { %v336_v8 = vpop.permute.xlu1 %335  ;;  %v332_v9 = vpop.permute.xlu0 %331 }
  0xc6   : > { %v347_v25 = vsel %vm330_vm0, -inf, %v332_v9  ;;  %v349_v41 = vsel %vm330_vm0, -inf, %v336_v8 }
  0xc9   : > { %v338_v10 = vpop.permute.xlu1 %337  ;;  %v334_v11 = vpop.permute.xlu0 %333 }
  0xca   : > { %v348_v26 = vsel %vm330_vm0, -inf, %v334_v11  ;;  %v350_v42 = vsel %vm330_vm0, -inf, %v338_v10 }
  0xcd   : > { %v342_v13 = vpop.permute.xlu1 %341  ;;  %v340_v14 = vpop.permute.xlu0 %339 }
  0xce   : > { %v352_v49 = vsel %vm330_vm0, -inf, %v342_v13  ;;  %v351_v50 = vsel %vm330_vm0, -inf, %v340_v14  ;;  %v229_v14 = vadd.s32 40, %v1081_v15 }
  0xd1   : > { %v1085_v17 = vpop.permute.xlu1 %345  ;;  %v1087_v18 = vpop.permute.xlu0 %343 }
  0xd2   : > { %v353_v43 = vsel %vm330_vm0, -inf, %v1087_v18 }
  0xd5   : > { %v359_v22 = vpop.permute.xlu1 %358  ;;  %v357_v23 = vpop.permute.xlu0 %356 }
  0xd6   : > { %v373_v27 = vsel %vm355_vm1, -inf, %v359_v22  ;;  %v372_v28 = vsel %vm355_vm1, -inf, %v357_v23 }
  0xd7   : > { %v381_v29 = vmax.f32 %v348_v26, %v373_v27  ;;  %v380_v30 = vmax.f32 %v347_v25, %v372_v28 }
  0xd9   : > { %v1104_v34 = vmax.f32 %v1057_v3, %v381_v29  ;;  %v1107_v35 = vmax.f32 %v1051_v1, %v380_v30  ;;  %v363_v36 = vpop.permute.xlu1 %362  ;;  %v361_v37 = vpop.permute.xlu0 %360 }
  0xda   : > { %v375_v39 = vsel %vm355_vm1, -inf, %v363_v36  ;;  %v374_v40 = vsel %vm355_vm1, -inf, %v361_v37 }
  0xdb   : > { %v383_v45 = vmax.f32 %v350_v42, %v375_v39  ;;  %v382_v47 = vmax.f32 %v349_v41, %v374_v40  ;;  %v405_v51 = vrot.slane %v1104_v34, 7  ;;  %v404_v52 = vrot.slane %v1107_v35, 7 }
  0xdc   : > { %v438_v8 = vrot.slane %v1104_v34, 1  ;;  %v354_v39 = vsel %vm330_vm0, -inf, %v1085_v17  ;;  %v271_v41 = vand.u32 15, %v229_v14  ;;  %v278_v42 = vand.u32 15, %v230_v19 }
  0xdd   : > { %v367_v53 = vpop.permute.xlu1 %366  ;;  %v365_v55 = vpop.permute.xlu0 %364  ;;  %v1143_v56 = vmax.f32 %v1055_v2, %v383_v45  ;;  %v390_v57 = vmax.f32 %v1049_v0, %v382_v47  ;;  %v419_v20 = vsel %vm412_vm2, %v404_v52, %v405_v51 }
  0xde   : > { %v377_v58 = vsel %vm355_vm1, -inf, %v367_v53  ;;  %v376_v59 = vsel %vm355_vm1, -inf, %v365_v55 }
  0xdf   : > { %v385_v60 = vmax.f32 %v352_v49, %v377_v58  ;;  %v384_v61 = vmax.f32 %v351_v50, %v376_v59  ;;  %v440_v9 = vrot.slane %v1143_v56, 1  ;;  %v406_v10 = vrot.slane %v390_v57, 7  ;;  %v218_v58 = vld [vmem:[%s1038_s3 + $0x18] sm:$0xff] }
  0xe0   : > { %v439_v11 = vrot.slane %v390_v57, 1  ;;  %v407_v26 = vrot.slane %v1143_v56, 7 }
  0xe1   : > { %v1154_v12 = vmax.f32 %v1061_v4, %v385_v60  ;;  %v1157_v13 = vmax.f32 %v1063_v5, %v384_v61  ;;  %v418_v22 = vsel %vm412_vm2, %v405_v51, %v406_v10  ;;  %v371_v25 = vpop.permute.xlu1 %370  ;;  %v369_v32 = vpop.permute.xlu0 %368  ;;  %v437_v60 = vrot.slane %v1107_v35, 1 }
  0xe2   : > { %v450_v23 = vsel %vm445_vm3, %v439_v11, %v440_v9  ;;  %v451_v24 = vsel %vm445_vm3, %v438_v8, %v439_v11  ;;  %v423_v27 = vsel %vm1119_vm4, -inf, %v418_v22  ;;  %v379_v40 = vsel %vm355_vm1, -inf, %v371_v25 }
  0xe3   : > { %v455_v28 = vsel %vm1124_vm5, -inf, %v451_v24  ;;  %v442_v29 = vrot.slane %v1154_v12, 1  ;;  %v464_v36 = vmax.f32 %v423_v27, %v450_v23  ;;  %v408_v37 = vrot.slane %v1157_v13, 7 }
  0xe4   : > { %v463_v33 = vmax.f32 %v419_v20, %v455_v28  ;;  %v441_v38 = vrot.slane %v1157_v13, 1  ;;  %v378_v17 = vsel %vm355_vm1, -inf, %v369_v32  ;;  %v387_v50 = vmax.f32 %v354_v39, %v379_v40  ;;  %v220_v40 = vld [vmem:[%s1038_s3 + $0x28] sm:$0xff] }
  0xe5   : > { %v472_v44 = vmax.f32 %v390_v57, %v464_v36  ;;  %v416_v45 = vsel %vm412_vm2, %v407_v26, %v408_v37  ;;  %v417_v51 = vsel %vm412_vm2, %v406_v10, %v407_v26  ;;  %v386_v59 = vmax.f32 %v353_v43, %v378_v17  ;;  %v221_v43 = vld [vmem:[%s1038_s3 + $0x30] sm:$0xff] }
  0xe6   : > { %v425_v47 = vsel %vm1128_vm6, -inf, %v416_v45  ;;  %v448_v18 = vsel %vm445_vm3, %v441_v38, %v442_v29  ;;  %v449_v49 = vsel %vm445_vm3, %v440_v9, %v441_v38  ;;  %v471_v16 = vmax.f32 %v1104_v34, %v463_v33 }
  0xe7   : > { %v457_v53 = vsel %vm1138_vm7, -inf, %v449_v49  ;;  %v466_v55 = vmax.f32 %v425_v47, %v448_v18  ;;  %v395_v57 = vmax.f32 %v1067_v6, %v387_v50  ;;  %vm480_vm1 = vcmp.eq.f32.partialorder %v1049_v0, %v472_v44 }
  0xe8   : > { %v465_v48 = vmax.f32 %v417_v51, %v457_v53  ;;  %vm1232_vm4 = vcmp.eq.s32.totalorder %v278_v42, 0  ;;  %v394_v10 = vmax.f32 %v1069_v7, %v386_v59  ;;  %vm479_vm5 = vcmp.eq.f32.partialorder %v1057_v3, %v471_v16  ;;  %vm1246_vm15 = vmand %vm480_vm1, %vm488_vm8 }
  0xe9   : > { %v474_v61 = vmax.f32 %v1157_v13, %v466_v55  ;;  %v411_v63 = vrot.slane %v395_v57, 7  ;;  %v444_v9 = vrot.slane %v395_v57, 1  ;;  %v409_v11 = vrot.slane %v1154_v12, 7  ;;  %vm1273_vm1 = vmand %vm479_vm5, %vm487_vm12 }
  0xea   : > { %v473_v54 = vmax.f32 %v1143_v56, %v465_v48  ;;  %vm1240_vm6 = vcmp.eq.s32.totalorder %v271_v41, 15  ;;  %vm505_vm7 = vcmp.ge.f32.partialorder %v218_v58, 0.7  ;;  %v410_v20 = vrot.slane %v394_v10, 7 }
  0xeb   : > { %v420_v56 = vsel %vm412_vm2, %v411_v63, %v404_v52  ;;  %v453_v19 = vsel %vm445_vm3, %v444_v9, %v437_v60  ;;  %v452_v0 = vsel %vm445_vm3, %v437_v60, %v438_v8  ;;  %v443_v24 = vrot.slane %v394_v10, 1  ;;  %v219_v8 = vld [vmem:[%s1038_s3 + $0x20] sm:$0xff] }
  0xec   : > { %vm481_vm0 = vcmp.eq.f32.partialorder %v1055_v2, %v473_v54  ;;  %v421_v23 = vsel %vm1184_vm10, -inf, %v420_v56  ;;  %v461_v52 = vsel %vm1188_vm11, -inf, %v453_v19  ;;  %vm1279_vm14 = vcmp.eq.f32.partialorder %v1063_v5, %v474_v61 }
  0xed   : > { %vm1263_vm8 = vmand %vm481_vm0, %vm489_vm9  ;;  %v462_v25 = vmax.f32 %v421_v23, %v452_v0  ;;  %v413_v26 = vsel %vm412_vm2, %v410_v20, %v411_v63  ;;  %v414_v27 = vsel %vm412_vm2, %v409_v11, %v410_v20  ;;  %v1478_v3 = vmov 0 }
  0xee   : > { %vm1291_vm9 = vmand %vm1246_vm15, %vm504_vm13  ;;  %v427_v28 = vsel %vm1232_vm4, -inf, %v414_v27  ;;  %v446_v30 = vsel %vm445_vm3, %v443_v24, %v444_v9  ;;  %v447_v31 = vsel %vm445_vm3, %v442_v29, %v443_v24  ;;  %v469_v32 = vmax.f32 %v413_v26, %v461_v52 }
  0xef   : > { %v1479_v3 = vsel %vm1291_vm9, 4294967295, %v1478_v3  ;;  %v415_v21 = vsel %vm412_vm2, %v408_v37, %v409_v11  ;;  %v470_v33 = vmax.f32 %v1107_v35, %v462_v25  ;;  %vm1309_vm10 = vmand %vm1263_vm8, %vm505_vm7  ;;  %v1480_v36 = vmov 0  ;;  %v215_v35 = vld [vmem:[%s1038_s3] sm:$0xff] }
  0xf0   : > { %v1481_v36 = vsel %vm1309_vm10, 4294967295, %v1480_v36  ;;  %v459_v38 = vsel %vm1240_vm6, -inf, %v447_v31  ;;  %v468_v39 = vmax.f32 %v427_v28, %v446_v30  ;;  %vm493_vm3 = vcmp.ge.f32.partialorder %v1067_v6, 0.7 }
  0xf1   : > { %vm506_vm11 = vcmp.ge.f32.partialorder %v219_v8, 0.7  ;;  %vm1482_vm12 = vcmp.ge.f32.partialorder %v1063_v5, 0.7  ;;  %v467_v29 = vmax.f32 %v415_v21, %v459_v38  ;;  %v477_v37 = vmax.f32 %v395_v57, %v469_v32 }
  0xf2   : > { %vm1320_vm2 = vmand %vm1279_vm14, %vm1482_vm12  ;;  %vm478_vm13 = vcmp.eq.f32.partialorder %v1051_v1, %v470_v33  ;;  %vm492_vm15 = vcmp.ge.f32.partialorder %v1069_v7, 0.7  ;;  %vm1485_vm0 = vcmp.ge.f32.partialorder %v1207_v46, 0.7  ;;  %v1486_v5 = vmov 0 }
  0xf3   : > { %vm1332_vm4 = vmand %vm1273_vm1, %vm1485_vm0  ;;  %v476_v41 = vmax.f32 %v394_v10, %v468_v39  ;;  %vm1488_vm5 = vcmp.ge.f32.partialorder %v1051_v1, 0.7  ;;  %v475_v44 = vmax.f32 %v1154_v12, %v467_v29  ;;  %vm485_vm8 = vcmp.eq.f32.partialorder %v1067_v6, %v477_v37  ;;  %v222_v1 = vld [vmem:[%s1038_s3 + $0x38] sm:$0xff] }
  0xf4   : > { %v1487_v5 = vsel %vm1332_vm4, 4294967295, %v1486_v5  ;;  %vm1339_vm6 = vmand %vm478_vm13, %vm1488_vm5  ;;  %v1491_v45 = vmov 0  ;;  %vm502_vm12 = vcmp.ge.f32.partialorder %v215_v35, 0.7  ;;  %vm507_vm5 = vcmp.ge.f32.partialorder %v220_v40, 0.7 }
  0xf5   : > { %vm1353_vm1 = vmand %vm1320_vm2, %vm506_vm11  ;;  %vm484_vm13 = vcmp.eq.f32.partialorder %v1069_v7, %v476_v41  ;;  %vm483_vm7 = vcmp.eq.f32.partialorder %v1061_v4, %v475_v44  ;;  %vm508_vm9 = vcmp.ge.f32.partialorder %v221_v43, 0.7  ;;  %vm1493_vm11 = vcmp.ge.f32.partialorder %v1061_v4, 0.7 }
  0xf6   : > { %v1492_v45 = vsel %vm1353_vm1, 4294967295, %v1491_v45  ;;  %vm501_vm0 = vmand %vm485_vm8, %vm493_vm3  ;;  %vm509_vm1 = vcmp.ge.f32.partialorder %v222_v1, 0.7  ;;  %v855_v4 = vmov 0  }
  0xf7   : > { %vm500_vm14 = vmand %vm484_vm13, %vm492_vm15  ;;  %vm1498_vm15 = vnez %v1487_v5 }
  0xf8   : > { %vm499_vm2 = vmand %vm483_vm7, %vm1493_vm11  ;;  %vm1499_vm7 = vnez %v1481_v36 }
  0xf9   : > { %vm510_vm10 = vmand %vm1339_vm6, %vm502_vm12  ;;  %vm1500_vm6 = vnez %v1479_v3 }
  0xfa   : > { %vm1369_vm4 = vmand %vm499_vm2, %vm507_vm5 }
  0xfb   : > { %vm1373_vm3 = vmand %vm500_vm14, %vm508_vm9  ;;  %vm1502_vm9 = vnez %v1492_v45 }
  0xfc   : > { %vm517_vm8 = vmand %vm501_vm0, %vm509_vm1 }
  0xfd   : > { %vm518_vm13 = vmpackc.low %vm1498_vm15, %vm510_vm10 }
  0xfe   : > { %vm1501_vm12 = vmpackc.low %vm1499_vm7, %vm1500_vm6 }
  0xff   : > { %vm520_vm5 = vmpackc.even %vm1501_vm12, %vm518_vm13 }
 0x100   : > { %vm521_vm14 = vmpackc.low %vm1369_vm4, %vm1502_vm9  ;;  %v524_v7 = vsel %vm520_vm5, 16843009, %v855_v4 }
 0x101   : > { %vm522_vm10 = vmpackc.low %vm517_vm8, %vm1373_vm3  ;;  %526 = vst [vmem:[%s201_s17] sm:$0xff] %v524_v7 }
 0x102   : > { %vm523_vm1 = vmpackc.even %vm522_vm10, %vm521_vm14 }
 0x103   : > { %v525_v46 = vsel %vm523_vm1, 16843009, %v855_v4 }
 0x104   : > { %527 = vst [vmem:[%s201_s17 + $0x8] sm:$0xff] %v525_v46 }
 0x105   : > { %790 = shalt.err (!%p787_p11)
}
 0x106   : > { %s791_s4 = scalar_lea.hbm %s1394_s26, 256  ;;  %s795_s23 = scalar_lea.hbm %s1442_s2, 512 }
 0x107   : > { %p792_p3 = scmp.ne.s32.totalorder %s1394_s26, %s791_s4  ;;  %p796_p2 = scmp.lt.u32.totalorder %s1394_s26, %s1442_s2 }
 0x108   : > { %p797_p4 = scmp.lt.u32.totalorder %s795_s23, %s791_s4  ;;  %p799_p13 = scmp.lt.u32.totalorder %s791_s4, %s1394_s26 }
 0x109   : > { %p793_p8 = pnand %p792_p3, %p1503_p1 }
 0x10a   : > { %p798_p6 = por %p797_p4, %p796_p2 }
 0x10b   : > { %p794_p0 = pneg %p793_p8 }
 0x10c   : > { %p800_p12 = por %p799_p13, %p798_p6 }
 0x10e   : > { %p801_p10 = pnand %p800_p12, %p794_p0 }
 0x110   : > { %804 = shalt.err (!%p801_p10)
}
 0x111   : > { %s857_s20 = smov 128   ;;  %s858_s6 = smov 8  }
 0x112   : > { %663 = dma.vmem_to_hbm [thread:$0]  (%p1503_p1), %s1396_s28, 256, %s1394_s26, %s529_s27, %s857_s20, %s857_s20, %s858_s6  }
 0x113 PF: > { %s557_s14 = sand.u32 1, %s835_s9   ;;  %p1504_p5 = scmp.ne.s32.totalorder %s1450_s22, 0 }
 0x114   : > { %p1505_p7 = scmp.ge.s32.totalorder %s847_s12, 2  ;;  %s558_s17 = scalar_lea.sflag [#allocation4], %s557_s14 }
 0x116   : > { %p673_p9 = pnand %p1505_p7, %p1504_p5 }
 0x118   : > { %830 = dma.done.wait (!%p673_p9), %s558_s17, 256  }
 0x119   : > { %832 = vsyncadd (!%p673_p9), %s558_s17, 4294967040  ;;  %p18_p11 = scmp.ge.s32.totalorder %s899_s15, 4   ;;  %s1506_s9 = smov %s839_s10 }
 0x11a   : > { %s1507_s10 = smov %s843_s11  ;;  %s1508_s11 = smov %s911_s18 }
 0x11b   : > { %s1509_s12 = smov %s899_s15  ;;  %20 = sbr.rel (!%p18_p11) target bundleno = 7 (0x7), region = 86 }
 0x122   :  { %563 = vsyncpa [#allocation3], 1 }
 0x123   :  { %565 = vsyncpa [#allocation3 + $0x1], 1 }
 0x124   :  { %566 = vsyncpa [#allocation6], 1 }
 0x125   :  { %568 = vsyncpa [#allocation6 + $0x1], 1 }
 0x126   :  { %569 = vsyncpa [#allocation4], 1 }
 0x127   :  { %571 = vsyncpa [#allocation4 + $0x1], 1 }

</bundles_post_ra>
